<compile_context>
chip_gen: v7x
topology: tpu7x:2x2x1
jax: 0.10.0
libtpu: 0.0.40
codegen_flags: <defaults>
</compile_context>

<pallas_src>
import jax
import jax.numpy as jnp
from jax.experimental import pallas as pl
from jax.experimental.pallas import tpu as pltpu

_LANES = 128  # vreg lane width


def _mlp_kernel(p_ref, x_ref, o_ref):
    # p_ref: SMEM f32[10] = [w1_0, w1_1, w1_2, b1_0, b1_1, b1_2,
    #                        w2_0, w2_1, w2_2, b2]
    # x_ref / o_ref: VMEM (TILE_R, 128) lane-dense batch slabs.
    x = x_ref[...]
    y = (p_ref[9]
         + p_ref[6] * jax.nn.sigmoid(p_ref[0] * x + p_ref[3])
         + p_ref[7] * jax.nn.sigmoid(p_ref[1] * x + p_ref[4])
         + p_ref[8] * jax.nn.sigmoid(p_ref[2] * x + p_ref[5]))
    o_ref[...] = y.astype(o_ref.dtype)


def net_forward(x, w1, b1, w2, b2, *, tile_rows=512):
    """Forward pass of Net.

    Args:
      x : (N, 1) float32
      w1: (3, 1) float32  (torch fc1.weight layout: [out_features, in_features])
      b1: (3,)   float32
      w2: (1, 3) float32  (torch fc2.weight layout)
      b2: (1,)   float32
    Returns:
      (N, 1) float32
    """
    n = x.shape[0]

    # Pack all 10 parameter scalars into one SMEM-resident vector.
    params = jnp.concatenate(
        [w1.reshape(-1), b1.reshape(-1), w2.reshape(-1), b2.reshape(-1)]
    ).astype(jnp.float32)  # (10,)

    # Lane-dense reshape of the batch, padded to whole (tile_rows, 128) tiles.
    x_flat = x.reshape(-1).astype(jnp.float32)
    rows_needed = -(-n // _LANES)                                   # ceil(N/128)
    tile_rows = max(8, min(tile_rows, ((rows_needed + 7) // 8) * 8))
    rows = -(-rows_needed // tile_rows) * tile_rows                 # pad to tiles
    pad = rows * _LANES - n
    x2d = jnp.pad(x_flat, (0, pad)).reshape(rows, _LANES)

    grid = (rows // tile_rows,)
    out2d = pl.pallas_call(
        _mlp_kernel,
        out_shape=jax.ShapeDtypeStruct((rows, _LANES), jnp.float32),
        grid_spec=pltpu.PrefetchScalarGridSpec(
            num_scalar_prefetch=1,
            grid=grid,
            in_specs=[pl.BlockSpec((tile_rows, _LANES), lambda i, p: (i, 0))],
            out_specs=pl.BlockSpec((tile_rows, _LANES), lambda i, p: (i, 0)),
        ),
        compiler_params=pltpu.CompilerParams(
            dimension_semantics=("parallel",)),
    )(params, x2d)

    # Strip padding, restore (N, 1).
    return out2d.reshape(-1)[:n].reshape(n, 1)


def _torch_like_linear_init(key, out_features, in_features):
    """Deterministic init mimicking torch.nn.Linear default (uniform +-1/sqrt(fan_in))."""
    bound = 1.0 / (in_features ** 0.5)
    kw, kb = jax.random.split(key)
    w = jax.random.uniform(kw, (out_features, in_features), jnp.float32, -bound, bound)
    b = jax.random.uniform(kb, (out_features,), jnp.float32, -bound, bound)
    return w, b


if __name__ == "__main__":
    # Deterministic parameters (shapes from Net.__init__).
    pk = jax.random.PRNGKey(42)
    pk1, pk2 = jax.random.split(pk)
    w1, b1 = _torch_like_linear_init(pk1, 3, 1)   # fc1: (3,1), (3,)
    w2, b2 = _torch_like_linear_init(pk2, 1, 3)   # fc2: (1,3), (1,)

    # Deterministic example input: batch of 8 scalars in [0, 2*pi).
    key = jax.random.PRNGKey(0)
    x = jax.random.uniform(key, (8, 1), jnp.float32, 0.0, 2.0 * jnp.pi)

    out = net_forward(x, w1, b1, w2, b2)
    jax.block_until_ready(out)

    # Pure-JAX reference check.
    ref = jax.nn.sigmoid(x @ w1.T + b1) @ w2.T + b2
    assert out.shape == (8, 1)
    assert jnp.allclose(out, ref, atol=1e-5), "mismatch vs reference"

    print("KERNEL_OK")
</pallas_src>

<mosaic_0001>
module attributes {stable_mosaic.version = 11 : i64} {
  func.func @_mlp_kernel(%arg0: i32, %arg1: memref<10xf32, #tpu.memory_space<smem>>, %arg2: memref<8x128xf32, #tpu.memory_space<vmem>>, %arg3: memref<8x128xf32, #tpu.memory_space<vmem>>) attributes {dimension_semantics = [#tpu.dimension_semantics<parallel>], iteration_bounds = array<i64: 1>, scalar_prefetch = 1 : i64, scratch_operands = 0 : i64, tpu.core_type = #tpu.core_type<tc>, window_params = [{transform_indices = @transform_0, window_bounds = array<i64: 8, 128>}, {transform_indices = @transform_1, window_bounds = array<i64: 8, 128>}]} {
    %c0 = arith.constant 0 : index
    %c0_0 = arith.constant 0 : index
    %0 = vector.load %arg2[%c0, %c0_0] : memref<8x128xf32, #tpu.memory_space<vmem>>, vector<8x128xf32>
    %c9 = arith.constant 9 : index
    %1 = memref.load %arg1[%c9] : memref<10xf32, #tpu.memory_space<smem>>
    %c6 = arith.constant 6 : index
    %2 = memref.load %arg1[%c6] : memref<10xf32, #tpu.memory_space<smem>>
    %c0_1 = arith.constant 0 : index
    %3 = memref.load %arg1[%c0_1] : memref<10xf32, #tpu.memory_space<smem>>
    %4 = vector.broadcast %3 : f32 to vector<8x128xf32>
    %5 = arith.mulf %4, %0 : vector<8x128xf32>
    %c3 = arith.constant 3 : index
    %6 = memref.load %arg1[%c3] : memref<10xf32, #tpu.memory_space<smem>>
    %7 = vector.broadcast %6 : f32 to vector<8x128xf32>
    %8 = arith.addf %5, %7 : vector<8x128xf32>
    %9 = arith.negf %8 : vector<8x128xf32>
    %10 = math.exp %9 : vector<8x128xf32>
    %cst = arith.constant 1.000000e+00 : f32
    %11 = vector.broadcast %cst : f32 to vector<8x128xf32>
    %12 = arith.addf %11, %10 : vector<8x128xf32>
    %13 = arith.divf %11, %12 : vector<8x128xf32>
    %14 = vector.broadcast %2 : f32 to vector<8x128xf32>
    %15 = arith.mulf %14, %13 : vector<8x128xf32>
    %16 = vector.broadcast %1 : f32 to vector<8x128xf32>
    %17 = arith.addf %16, %15 : vector<8x128xf32>
    %c7 = arith.constant 7 : index
    %18 = memref.load %arg1[%c7] : memref<10xf32, #tpu.memory_space<smem>>
    %c1 = arith.constant 1 : index
    %19 = memref.load %arg1[%c1] : memref<10xf32, #tpu.memory_space<smem>>
    %20 = vector.broadcast %19 : f32 to vector<8x128xf32>
    %21 = arith.mulf %20, %0 : vector<8x128xf32>
    %c4 = arith.constant 4 : index
    %22 = memref.load %arg1[%c4] : memref<10xf32, #tpu.memory_space<smem>>
    %23 = vector.broadcast %22 : f32 to vector<8x128xf32>
    %24 = arith.addf %21, %23 : vector<8x128xf32>
    %25 = arith.negf %24 : vector<8x128xf32>
    %26 = math.exp %25 : vector<8x128xf32>
    %cst_2 = arith.constant 1.000000e+00 : f32
    %27 = vector.broadcast %cst_2 : f32 to vector<8x128xf32>
    %28 = arith.addf %27, %26 : vector<8x128xf32>
    %29 = arith.divf %27, %28 : vector<8x128xf32>
    %30 = vector.broadcast %18 : f32 to vector<8x128xf32>
    %31 = arith.mulf %30, %29 : vector<8x128xf32>
    %32 = arith.addf %17, %31 : vector<8x128xf32>
    %c8 = arith.constant 8 : index
    %33 = memref.load %arg1[%c8] : memref<10xf32, #tpu.memory_space<smem>>
    %c2 = arith.constant 2 : index
    %34 = memref.load %arg1[%c2] : memref<10xf32, #tpu.memory_space<smem>>
    %35 = vector.broadcast %34 : f32 to vector<8x128xf32>
    %36 = arith.mulf %35, %0 : vector<8x128xf32>
    %c5 = arith.constant 5 : index
    %37 = memref.load %arg1[%c5] : memref<10xf32, #tpu.memory_space<smem>>
    %38 = vector.broadcast %37 : f32 to vector<8x128xf32>
    %39 = arith.addf %36, %38 : vector<8x128xf32>
    %40 = arith.negf %39 : vector<8x128xf32>
    %41 = math.exp %40 : vector<8x128xf32>
    %cst_3 = arith.constant 1.000000e+00 : f32
    %42 = vector.broadcast %cst_3 : f32 to vector<8x128xf32>
    %43 = arith.addf %42, %41 : vector<8x128xf32>
    %44 = arith.divf %42, %43 : vector<8x128xf32>
    %45 = vector.broadcast %33 : f32 to vector<8x128xf32>
    %46 = arith.mulf %45, %44 : vector<8x128xf32>
    %47 = arith.addf %32, %46 : vector<8x128xf32>
    %c0_4 = arith.constant 0 : index
    %c0_5 = arith.constant 0 : index
    %48 = vector.load %arg3[%c0_4, %c0_5] : memref<8x128xf32, #tpu.memory_space<vmem>>, vector<8x128xf32>
    tpu.vector_store %arg3[%c0_4, %c0_5], %47 {strides = array<i32>} : memref<8x128xf32, #tpu.memory_space<vmem>>, vector<8x128xf32>,
    return
  }
  func.func @transform_0(%arg0: i32, %arg1: memref<10xf32, #tpu.memory_space<smem>>) -> (i32, i32) {
    %c0_i32 = arith.constant 0 : i32
    %c0_i32_0 = arith.constant 0 : i32
    return %arg0, %c0_i32 : i32, i32
  }
  func.func @transform_1(%arg0: i32, %arg1: memref<10xf32, #tpu.memory_space<smem>>) -> (i32, i32) {
    %c0_i32 = arith.constant 0 : i32
    %c0_i32_0 = arith.constant 0 : i32
    return %arg0, %c0_i32 : i32, i32
  }
}

</mosaic_0001>

<bundles_post_ra>
// kernel: tpu_custom_call.1
= control target key start
LH: loop header
LB: loop body
LE: loop exit
PB: predicated region body
PF: predicated region fallthrough
CT: control target
= control target key end

     0   :  { %s234_s0 = inlined_call_operand.hbm [shape: f32[10], index: 0, kind: input, shape index: {}]   ;;  %s235_s1 = inlined_call_operand.hbm [shape: f32[8,128], index: 1, kind: input, shape index: {}]   ;;  %s236_s2 = inlined_call_operand.hbm [shape: f32[8,128], index: 2, kind: output, shape index: {}]  }
   0x1   :  { %s120_s11 = scalar_lea.hbm %s234_s0, 16 }
   0x2   :  { %p121_p0 = scmp.ne.s32.totalorder %s234_s0, %s120_s11  ;;  %p124_p1 = scmp.lt.u32.totalorder %s120_s11, %s234_s0 }
   0x4   :  { %p126_p2 = pnand %p124_p1, %p121_p0 }
   0x6   :  { %129 = shalt.err (!%p126_p2)  }
   0x7   :  { %s180_s16 = smov [#allocation3]  }
   0x8   :  { %8 = dma.hbm_to_smem %s234_s0, 16, %s180_s16, [#allocation2] }
   0x9   :  { %174 = dma.done.wait [#allocation2], 16 }
   0xa   :  { %175 = vsyncadd [#allocation2], 4294967280 }
   0xb   :  { %10 = sfence }
   0xc   :  { %11 = vsyncpa [#allocation5], 0 }
   0xd   :  { %12 = vsyncpa [#allocation6], 0  ;;  %s181_s19 = smov [#allocation4]   ;;  %s130_s23 = scalar_lea.hbm %s235_s1, 128 }
   0xe   :  { %s19_s20 = sshll.u32 %s181_s19, 4  ;;  %p131_p3 = scmp.ne.s32.totalorder %s235_s1, %s130_s23  ;;  %s20_s20 = int_to_ptr.vmem [resolvable:$true] %s19_s20 }
   0xf   :  { %p134_p4 = scmp.lt.u32.totalorder %s130_s23, %s235_s1 }
  0x11   :  { %p136_p5 = pnand %p134_p4, %p131_p3 }
  0x13   :  { %139 = shalt.err (!%p136_p5)
}
  0x14   :  { %s140_s0 = scalar_lea.vmem %s20_s20, 128  ;;  %p145_p7 = scmp.lt.s32.totalorder %s20_s20, %s20_s20 }
  0x15   :  { %p141_p6 = scmp.ne.s32.totalorder %s20_s20, %s140_s0  ;;  %p146_p8 = scmp.lt.s32.totalorder %s140_s0, %s140_s0 }
  0x17   :  { %p147_p9 = por %p146_p8, %p145_p7 }
  0x19   :  { %p148_p10 = pnand %p147_p9, %p141_p6 }
  0x1b   :  { %151 = shalt.err (!%p148_p10)
}
  0x1c   :  { %22 = dma.hbm_to_vmem [thread:$0]  %s235_s1, 128, %s20_s20, [#allocation5]  }
  0x1d   :  { %176 = dma.done.wait [#allocation5], 128  }
  0x1e   :  { %177 = vsyncadd [#allocation5], 4294967168  ;;  %s29_s30 = sld [smem:[#allocation3]]  ;;  %s95_s3 = sld [smem:[#allocation3 + $0x3]]  ;;  %v26_v0 = vld [vmem:[#allocation4] sm:$0xff] }
  0x1f   :  { %s98_s4 = sld [smem:[#allocation3 + $0x1]]  ;;  %s99_s5 = sld [smem:[#allocation3 + $0x4]] }
  0x20   :  { %s102_s6 = sld [smem:[#allocation3 + $0x2]]  ;;  %s103_s7 = sld [smem:[#allocation3 + $0x5]] }
  0x21   :  { %s94_s1 = sld [smem:[#allocation3 + $0x6]]  ;;  %s97_s8 = sld [smem:[#allocation3 + $0x7]] }
  0x22   :  { %s93_s9 = sld [smem:[#allocation3 + $0x9]]  ;;  %s101_s10 = sld [smem:[#allocation3 + $0x8]] }
  0x23   :  { %s182_s11 = smov [#allocation7]  }
  0x24   :  { %v30_v1 = vstv %s29_s30  ;;  %v33_v2 = vstv %s95_s3  ;;  %s84_s12 = sshll.u32 %s182_s11, 4  ;;  %s85_s12 = int_to_ptr.vmem [resolvable:$true] %s84_s12 }
  0x25   :  { %v31_v3 = vmul.f32 %v30_v1, %v26_v0  ;;  %v47_v4 = vstv %s98_s4  ;;  %v50_v6 = vstv %s99_s5  ;;  %s152_s13 = scalar_lea.vmem %s85_s12, 128  ;;  %p157_p12 = scmp.lt.s32.totalorder %s85_s12, %s85_s12 }
  0x26   :  { %v48_v5 = vmul.f32 %v47_v4, %v26_v0  ;;  %v63_v8 = vstv %s102_s6  ;;  %v66_v9 = vstv %s103_s7  ;;  %p153_p11 = scmp.ne.s32.totalorder %s85_s12, %s152_s13  ;;  %p158_p13 = scmp.lt.s32.totalorder %s152_s13, %s152_s13 }
  0x27   :  { %v34_v7 = vadd.f32 %v33_v2, %v31_v3  ;;  %v64_v11 = vmul.f32 %v63_v8, %v26_v0  ;;  %v41_v22 = vstv %s94_s1  ;;  %v58_v23 = vstv %s97_s8 }
  0x28   :  { %v51_v10 = vadd.f32 %v50_v6, %v48_v5  ;;  %v43_v25 = vstv %s93_s9  ;;  %v74_v28 = vstv %s101_s10  ;;  %p159_p0 = por %p158_p13, %p157_p12 }
  0x29   :  { %v96_v12 = vmul.f32 -1.442695, %v34_v7  ;;  %v67_v14 = vadd.f32 %v66_v9, %v64_v11 }
  0x2a   :  { %v100_v13 = vmul.f32 -1.442695, %v51_v10  ;;  %p160_p1 = pnand %p159_p0, %p153_p11 }
  0x2b   :  { %108 = vpow2.f32 %v96_v12  ;;  %v104_v15 = vmul.f32 -1.442695, %v67_v14 }
  0x2c   :  { %110 = vpow2.f32 %v100_v13 }
  0x2d   :  { %112 = vpow2.f32 %v104_v15 }
  0x35   :  { %v109_v16 = vpop.eup %108 }
  0x36   :  { %v111_v17 = vpop.eup %110  ;;  %v38_v18 = vadd.f32 1.0, %v109_v16 }
  0x37   :  { %v55_v19 = vadd.f32 1.0, %v111_v17  ;;  %v113_v20 = vpop.eup %112 }
  0x38   :  { %114 = vrcp.f32 %v38_v18  ;;  %v71_v21 = vadd.f32 1.0, %v113_v20 }
  0x39   :  { %116 = vrcp.f32 %v55_v19 }
  0x3a   :  { %118 = vrcp.f32 %v71_v21 }
  0x42   :  { %v115_v24 = vpop.eup %114 }
  0x43   :  { %v117_v26 = vpop.eup %116  ;;  %v42_v27 = vmul.f32 %v115_v24, %v41_v22 }
  0x44   :  { %v59_v29 = vmul.f32 %v117_v26, %v58_v23  ;;  %v119_v30 = vpop.eup %118 }
  0x45   :  { %v44_v31 = vadd.f32 %v43_v25, %v42_v27  ;;  %v75_v32 = vmul.f32 %v119_v30, %v74_v28 }
  0x47   :  { %v60_v33 = vadd.f32 %v59_v29, %v44_v31 }
  0x49   :  { %v76_v34 = vadd.f32 %v75_v32, %v60_v33 }
  0x4b   :  { %77 = vst [vmem:[#allocation7] sm:$0xff] %v76_v34 }
  0x4c   :  { %163 = shalt.err (!%p160_p1)
}
  0x4d   :  { %s164_s16 = scalar_lea.hbm %s236_s2, 128 }
  0x4e   :  { %p165_p2 = scmp.ne.s32.totalorder %s236_s2, %s164_s16  ;;  %p168_p3 = scmp.lt.u32.totalorder %s164_s16, %s236_s2 }
  0x50   :  { %p170_p4 = pnand %p168_p3, %p165_p2 }
  0x52   :  { %173 = shalt.err (!%p170_p4)
}
  0x53   :  { %87 = dma.vmem_to_hbm [thread:$0]  %s85_s12, 128, %s236_s2, [#allocation6]  }
  0x54   :  { %178 = dma.done.wait [#allocation6], 128  }
  0x55   :  { %179 = vsyncadd [#allocation6], 4294967168 }
  0x56   :  { %91 = vsyncpa [#allocation5], 1 }
  0x57   :  { %92 = vsyncpa [#allocation6], 1 }

</bundles_post_ra>
